<compile_context>
chip_gen: v6e
topology: v6e:2x2x1
jax: 0.10.0
libtpu: 0.0.40
codegen_flags: <defaults>
</compile_context>

<pallas_src>
import jax
import jax.numpy as jnp
from jax import lax
from jax.experimental import pallas as pl
from jax.experimental.pallas import tpu as pltpu


def mean_update_kernel(idx_col_ref, idx_row_ref, uc_ref, data_ref, mem_ref, out_ref):
    b, t, _ = data_ref.shape
    M = mem_ref.shape[0]

    idx_col = idx_col_ref[...]                                    # (b, 1) int32
    idx_row = idx_row_ref[...]                                    # (1, b) int32

    # ---- tiny, K-invariant per-row weights (all (b,1)/(b,b)/(b,M)) ----
    # same[j, k] = 1.0 iff indices[j] == indices[k]
    same = (idx_col == idx_row).astype(jnp.float32)               # (b, b)
    # counts[j] = bincount(indices)[indices[j]]
    counts = jnp.sum(same, axis=-1, keepdims=True)                # (b, 1)

    # one_hot[j, m] = 1.0 iff indices[j] == m
    mem_ids = lax.broadcasted_iota(jnp.int32, (b, M), 1)          # (b, M)
    one_hot = (mem_ids == idx_col).astype(jnp.float32)            # (b, M)

    # uc_g[j] = update_counter[indices[j]];  blend weight 1 / (uc + 1)
    uc_g = jnp.sum(one_hot * uc_ref[...], axis=-1, keepdims=True)  # (b, 1)
    inv_uc = 1.0 / (uc_g + 1.0)                                    # (b, 1)

    # Fold 1/t, 1/count and the convex-blend weights into the masks so the
    # wide (b, K_blk) arrays only see two weighted reduces + one add.
    #   out = (1 - inv_uc) * memory[idx] + inv_uc * (same @ (data_sum / t)) / counts
    w_upd = same * (inv_uc / counts) * jnp.float32(1.0 / t)        # (b, b)
    w_mem = one_hot * (1.0 - inv_uc)                               # (b, M)

    # ---- wide work on the lane-dense K block ----
    data_sum = jnp.sum(data_ref[...], axis=1)                      # (b, K_blk) sum over time

    # Exact-f32 masked contractions (at large b / M these would become MXU
    # jnp.dot calls instead of broadcast-reduces).
    upd_term = jnp.sum(w_upd[:, :, None] * data_sum[None, :, :], axis=1)      # (b, K_blk)
    mem_term = jnp.sum(w_mem[:, :, None] * mem_ref[...][None, :, :], axis=1)  # (b, K_blk)

    out_ref[...] = mem_term + upd_term


def _pick_lane_block(K: int) -> int:
    # Largest lane-aligned block that evenly divides K (caps VMEM per block);
    # fall back to the full extent when K is not a multiple of 128.
    for cand in (2048, 1024, 512, 256, 128):
        if K >= cand and K % cand == 0:
            return cand
    return K


@jax.jit
def mean_update(memory, data, indices, update_counter):
    b, t, n, f = data.shape
    M = memory.shape[0]
    K = n * f

    # Layout plumbing only: flatten (n, f) -> lane-dense K axis.
    data_flat = data.reshape(b, t, K).astype(jnp.float32)
    mem_flat = memory.reshape(M, K).astype(jnp.float32)
    uc_row = update_counter.reshape(1, M).astype(jnp.float32)
    idx_col = indices.reshape(b, 1).astype(jnp.int32)
    idx_row = indices.reshape(1, b).astype(jnp.int32)

    blk = _pick_lane_block(K)
    grid = (K // blk,)

    out_flat = pl.pallas_call(
        mean_update_kernel,
        out_shape=jax.ShapeDtypeStruct((b, K), jnp.float32),
        grid_spec=pltpu.PrefetchScalarGridSpec(
            num_scalar_prefetch=0,
            grid=grid,
            in_specs=[
                pl.BlockSpec((b, 1), lambda k: (0, 0)),           # idx_col
                pl.BlockSpec((1, b), lambda k: (0, 0)),           # idx_row
                pl.BlockSpec((1, M), lambda k: (0, 0)),           # update_counter (as f32)
                pl.BlockSpec((b, t, blk), lambda k: (0, 0, k)),   # data (K-tiled)
                pl.BlockSpec((M, blk), lambda k: (0, k)),         # memory (K-tiled)
            ],
            out_specs=pl.BlockSpec((b, blk), lambda k: (0, k)),
        ),
        compiler_params=pltpu.CompilerParams(
            dimension_semantics=("parallel",),
            vmem_limit_bytes=32 * 1024 * 1024,
        ),
    )(idx_col, idx_row, uc_row, data_flat, mem_flat)

    return out_flat.reshape(b, n, f)


def mean_update_ref(memory, data, indices, update_counter):
    # Pure-JAX mirror of the PyTorch forward (uses the post-increment counter,
    # exactly like the in-place `update_counter[indices] += 1`).
    M = memory.shape[0]
    bincnt = jnp.bincount(indices, length=M)
    local = bincnt[indices].astype(jnp.float32)                       # (b,)
    uc_new = (update_counter[indices] + 1).astype(jnp.float32)        # (b,)
    update_data = data.mean(axis=1)                                   # (b, n, f)
    sum_store = jnp.zeros_like(memory).at[indices].add(update_data)   # (M, n, f)
    mean_update = sum_store[indices] / local[:, None, None]
    mem_g = memory[indices]
    return mem_g + (mean_update - mem_g) * (1.0 / uc_new)[:, None, None]


if __name__ == "__main__":
    key = jax.random.PRNGKey(0)
    b, t, n, f, M = 3, 4, 8, 16, 5   # batch, time, nodes, features, #memory slots

    kd, km, kc = jax.random.split(key, 3)
    data = jax.random.normal(kd, (b, t, n, f), dtype=jnp.float32)
    memory = jax.random.normal(km, (M, n, f), dtype=jnp.float32)
    # Deterministic indices with a duplicate to exercise the bincount /
    # index_add-over-duplicates path.
    indices = jnp.array([2, 4, 2], dtype=jnp.int32)
    update_counter = jax.random.randint(kc, (M,), 0, 7, dtype=jnp.int32)

    out = mean_update(memory, data, indices, update_counter)
    out = jax.block_until_ready(out)

    ref = mean_update_ref(memory, data, indices, update_counter)
    assert out.shape == (b, n, f), out.shape
    assert jnp.allclose(out, ref, atol=1e-4, rtol=1e-4), (out, ref)
    print("KERNEL_OK")
</pallas_src>

<mosaic_0001>
module attributes {stable_mosaic.version = 11 : i64} {
  func.func @mean_update_kernel(%arg0: i32, %arg1: memref<3x1xi32, #tpu.memory_space<vmem>>, %arg2: memref<1x3xi32, #tpu.memory_space<vmem>>, %arg3: memref<1x5xf32, #tpu.memory_space<vmem>>, %arg4: memref<3x4x128xf32, #tpu.memory_space<vmem>>, %arg5: memref<5x128xf32, #tpu.memory_space<vmem>>, %arg6: memref<3x128xf32, #tpu.memory_space<vmem>>) attributes {dimension_semantics = [#tpu.dimension_semantics<parallel>], iteration_bounds = array<i64: 1>, scalar_prefetch = 0 : i64, scratch_operands = 0 : i64, tpu.core_type = #tpu.core_type<tc>, window_params = [{pipeline_mode = #tpu.pipeline_mode<synchronous>, transform_indices = @transform_0, window_bounds = array<i64: 3, 1>}, {pipeline_mode = #tpu.pipeline_mode<synchronous>, transform_indices = @transform_1, window_bounds = array<i64: 1, 3>}, {pipeline_mode = #tpu.pipeline_mode<synchronous>, transform_indices = @transform_2, window_bounds = array<i64: 1, 5>}, {transform_indices = @transform_3, window_bounds = array<i64: 3, 4, 128>}, {transform_indices = @transform_4, window_bounds = array<i64: 5, 128>}, {transform_indices = @transform_5, window_bounds = array<i64: 3, 128>}]} {
    %c0 = arith.constant 0 : index
    %c0_0 = arith.constant 0 : index
    %0 = vector.load %arg1[%c0, %c0_0] : memref<3x1xi32, #tpu.memory_space<vmem>>, vector<3x1xi32>
    %c0_1 = arith.constant 0 : index
    %c0_2 = arith.constant 0 : index
    %1 = vector.load %arg2[%c0_1, %c0_2] : memref<1x3xi32, #tpu.memory_space<vmem>>, vector<1x3xi32>
    %2 = vector.broadcast %0 : vector<3x1xi32> to vector<3x3xi32>
    %3 = vector.broadcast %1 : vector<1x3xi32> to vector<3x3xi32>
    %4 = arith.cmpi eq, %2, %3 : vector<3x3xi32>
    %5 = arith.extui %4 : vector<3x3xi1> to vector<3x3xi32>
    %6 = arith.sitofp %5 : vector<3x3xi32> to vector<3x3xf32>
    %cst = arith.constant dense<0.000000e+00> : vector<3xf32>
    %7 = vector.multi_reduction <add>, %6, %cst [1] : vector<3x3xf32> to vector<3xf32>
    %8 = vector.shape_cast %7 : vector<3xf32> to vector<3x1xf32>
    %9 = tpu.iota {dimensions = array<i32: 1>} : vector<3x5xi32>
    %10 = vector.broadcast %0 : vector<3x1xi32> to vector<3x5xi32>
    %11 = arith.cmpi eq, %9, %10 : vector<3x5xi32>
    %12 = arith.extui %11 : vector<3x5xi1> to vector<3x5xi32>
    %13 = arith.sitofp %12 : vector<3x5xi32> to vector<3x5xf32>
    %c0_3 = arith.constant 0 : index
    %c0_4 = arith.constant 0 : index
    %14 = vector.load %arg3[%c0_3, %c0_4] : memref<1x5xf32, #tpu.memory_space<vmem>>, vector<1x5xf32>
    %15 = vector.broadcast %14 : vector<1x5xf32> to vector<3x5xf32>
    %16 = arith.mulf %13, %15 : vector<3x5xf32>
    %cst_5 = arith.constant dense<0.000000e+00> : vector<3xf32>
    %17 = vector.multi_reduction <add>, %16, %cst_5 [1] : vector<3x5xf32> to vector<3xf32>
    %18 = vector.shape_cast %17 : vector<3xf32> to vector<3x1xf32>
    %cst_6 = arith.constant 1.000000e+00 : f32
    %19 = vector.broadcast %cst_6 : f32 to vector<3x1xf32>
    %20 = arith.addf %18, %19 : vector<3x1xf32>
    %cst_7 = arith.constant 1.000000e+00 : f32
    %21 = vector.broadcast %cst_7 : f32 to vector<3x1xf32>
    %22 = arith.divf %21, %20 : vector<3x1xf32>
    %23 = arith.divf %22, %8 : vector<3x1xf32>
    %24 = vector.broadcast %23 : vector<3x1xf32> to vector<3x3xf32>
    %25 = arith.mulf %6, %24 : vector<3x3xf32>
    %cst_8 = arith.constant 2.500000e-01 : f32
    %26 = vector.broadcast %cst_8 : f32 to vector<3x3xf32>
    %27 = arith.mulf %25, %26 : vector<3x3xf32>
    %cst_9 = arith.constant 1.000000e+00 : f32
    %28 = vector.broadcast %cst_9 : f32 to vector<3x1xf32>
    %29 = arith.subf %28, %22 : vector<3x1xf32>
    %30 = vector.broadcast %29 : vector<3x1xf32> to vector<3x5xf32>
    %31 = arith.mulf %13, %30 : vector<3x5xf32>
    %c0_10 = arith.constant 0 : index
    %c0_11 = arith.constant 0 : index
    %c0_12 = arith.constant 0 : index
    %32 = vector.load %arg4[%c0_10, %c0_11, %c0_12] : memref<3x4x128xf32, #tpu.memory_space<vmem>>, vector<3x4x128xf32>
    %cst_13 = arith.constant dense<0.000000e+00> : vector<3x128xf32>
    %33 = vector.multi_reduction <add>, %32, %cst_13 [1] : vector<3x4x128xf32> to vector<3x128xf32>
    %34 = vector.shape_cast %27 : vector<3x3xf32> to vector<3x3x1xf32>
    %35 = vector.shape_cast %33 : vector<3x128xf32> to vector<1x3x128xf32>
    %36 = vector.broadcast %34 : vector<3x3x1xf32> to vector<3x3x128xf32>
    %37 = vector.broadcast %35 : vector<1x3x128xf32> to vector<3x3x128xf32>
    %38 = arith.mulf %36, %37 : vector<3x3x128xf32>
    %cst_14 = arith.constant dense<0.000000e+00> : vector<3x128xf32>
    %39 = vector.multi_reduction <add>, %38, %cst_14 [1] : vector<3x3x128xf32> to vector<3x128xf32>
    %40 = vector.shape_cast %31 : vector<3x5xf32> to vector<3x5x1xf32>
    %c0_15 = arith.constant 0 : index
    %c0_16 = arith.constant 0 : index
    %41 = vector.load %arg5[%c0_15, %c0_16] : memref<5x128xf32, #tpu.memory_space<vmem>>, vector<5x128xf32>
    %42 = vector.shape_cast %41 : vector<5x128xf32> to vector<1x5x128xf32>
    %43 = vector.broadcast %40 : vector<3x5x1xf32> to vector<3x5x128xf32>
    %44 = vector.broadcast %42 : vector<1x5x128xf32> to vector<3x5x128xf32>
    %45 = arith.mulf %43, %44 : vector<3x5x128xf32>
    %cst_17 = arith.constant dense<0.000000e+00> : vector<3x128xf32>
    %46 = vector.multi_reduction <add>, %45, %cst_17 [1] : vector<3x5x128xf32> to vector<3x128xf32>
    %47 = arith.addf %46, %39 : vector<3x128xf32>
    %c0_18 = arith.constant 0 : index
    %c0_19 = arith.constant 0 : index
    %48 = vector.load %arg6[%c0_18, %c0_19] : memref<3x128xf32, #tpu.memory_space<vmem>>, vector<3x128xf32>
    tpu.vector_store %arg6[%c0_18, %c0_19], %47 {strides = array<i32>} : memref<3x128xf32, #tpu.memory_space<vmem>>, vector<3x128xf32>,
    return
  }
  func.func @transform_0(%arg0: i32) -> (i32, i32) {
    %c0_i32 = arith.constant 0 : i32
    %c0_i32_0 = arith.constant 0 : i32
    %c0_i32_1 = arith.constant 0 : i32
    return %c0_i32, %c0_i32_0 : i32, i32
  }
  func.func @transform_1(%arg0: i32) -> (i32, i32) {
    %c0_i32 = arith.constant 0 : i32
    %c0_i32_0 = arith.constant 0 : i32
    %c0_i32_1 = arith.constant 0 : i32
    return %c0_i32, %c0_i32_0 : i32, i32
  }
  func.func @transform_2(%arg0: i32) -> (i32, i32) {
    %c0_i32 = arith.constant 0 : i32
    %c0_i32_0 = arith.constant 0 : i32
    %c0_i32_1 = arith.constant 0 : i32
    return %c0_i32, %c0_i32_0 : i32, i32
  }
  func.func @transform_3(%arg0: i32) -> (i32, i32, i32) {
    %c0_i32 = arith.constant 0 : i32
    %c0_i32_0 = arith.constant 0 : i32
    %c0_i32_1 = arith.constant 0 : i32
    return %c0_i32, %c0_i32_0, %arg0 : i32, i32, i32
  }
  func.func @transform_4(%arg0: i32) -> (i32, i32) {
    %c0_i32 = arith.constant 0 : i32
    %c0_i32_0 = arith.constant 0 : i32
    return %c0_i32, %arg0 : i32, i32
  }
  func.func @transform_5(%arg0: i32) -> (i32, i32) {
    %c0_i32 = arith.constant 0 : i32
    %c0_i32_0 = arith.constant 0 : i32
    return %c0_i32, %arg0 : i32, i32
  }
}

</mosaic_0001>

<bundles_post_ra>
// kernel: mean_update.1
= control target key start
LH: loop header
LB: loop body
LE: loop exit
PB: predicated region body
PF: predicated region fallthrough
CT: control target
= control target key end

     0   :  { %v213_v0 = vmov 0   ;;  %v36_v2 = vlaneseq  ;;  %vm32_vm0 = vcmask 18432   ;;  %v214_v7 = vmov 0.0   ;;  %s276_s0 = inlined_call_operand.vmem [shape: s32[3,1], index: 0, kind: input, shape index: {}]   ;;  %s277_s1 = inlined_call_operand.vmem [shape: s32[1,3], index: 1, kind: input, shape index: {}]   ;;  %s278_s2 = inlined_call_operand.vmem [shape: f32[1,5], index: 2, kind: input, shape index: {}]   ;;  %s279_s3 = inlined_call_operand.vmem [shape: f32[3,4,128], index: 3, kind: input, shape index: {}]   ;;  %s280_s4 = inlined_call_operand.vmem [shape: f32[5,128], index: 4, kind: input, shape index: {}]   ;;  %s281_s5 = inlined_call_operand.vmem [shape: f32[3,128], index: 5, kind: output, shape index: {}]  }
   0x1   :  { %208 = vset.pattern.permute.xlu0 %v213_v0  ;;  %v20_v1 = vld [vmem:[%s276_s0] sm:$0x7]  ;;  %vm49_vm3 = vcmask 34816   ;;  %v63_v34 = vld [vmem:[%s279_s3 + $0x4] sm:$0xf]  ;;  %vm65_vm4 = vcmask 1043456  }
   0x2   :  { %23 = vperm.xlu0 %208, %v20_v1   ;;  %v37_v3 = vand.u32 127, %v36_v2  ;;  %v202_v4 = vld [vmem:[%s277_s1] ss:$0 sm:$0xff]  ;;  %v88_v16 = vshrl.u32 %v36_v2, 7  ;;  %v64_v35 = vld [vmem:[%s279_s3 + $0x8] sm:$0xf] }
   0x3   :  { %v205_v6 = vld [vmem:[%s278_s2] ss:$0 sm:$0xff]  ;;  %v73_v37 = vsel %vm65_vm4, %v63_v34, 0.0  ;;  %v80_v40 = vsel %vm65_vm4, %v64_v35, 0.0  ;;  %vm111_vm5 = vcmask 1041409   ;;  %vm166_vm6 = vcmask 1044480  }
   0x4   :  { %v103_v20 = vsub.s32 2, %v88_v16  ;;  %v89_v21 = vsub.s32 0, %v88_v16  ;;  %v96_v26 = vsub.s32 1, %v88_v16  ;;  %v62_v33 = vld [vmem:[%s279_s3] sm:$0xf]  ;;  %v74_v39 = vrot.slane %v73_v37, 4 }
   0x5   :  { %v66_v36 = vsel %vm65_vm4, %v62_v33, 0.0  ;;  %v81_v41 = vrot.slane %v80_v40, 4  ;;  %v162_v54 = vld [vmem:[%s280_s4] sm:$0x1f]  ;;  %vm113_vm7 = vcmask 1042434   ;;  %vm119_vm8 = vcmask 1042432  }
   0x6   :  { %v67_v38 = vrot.slane %v66_v36, 4  ;;  %v75_v43 = vadd.f32 %v74_v39, %v73_v37 }
   0x7   :  { %v82_v44 = vadd.f32 %v81_v41, %v80_v40 }
   0x8   :  { %v68_v42 = vadd.f32 %v67_v38, %v66_v36  ;;  %v76_v46 = vrot.slane %v75_v43, 2 }
   0x9   :  { %v83_v47 = vrot.slane %v82_v44, 2 }
   0xa   :  { %v69_v45 = vrot.slane %v68_v42, 2  ;;  %v77_v49 = vadd.f32 %v76_v46, %v75_v43 }
   0xb   :  { %v84_v50 = vadd.f32 %v83_v47, %v82_v44 }
   0xc   :  { %v70_v48 = vadd.f32 %v69_v45, %v68_v42  ;;  %v78_v52 = vrot.slane %v77_v49, 1 }
   0xd   :  { %v85_v53 = vrot.slane %v84_v50, 1 }
   0xe   :  { %v71_v51 = vrot.slane %v70_v48, 1  ;;  %v79_v56 = vadd.f32 %v78_v52, %v77_v49 }
   0xf   :  { %v86_v60 = vadd.f32 %v85_v53, %v84_v50 }
  0x10   :  { %v72_v55 = vadd.f32 %v71_v51, %v70_v48 }
  0x12   :  { %v112_v62 = vsel %vm111_vm5, %v79_v56, %v72_v55 }
  0x13   :  { %v114_v2 = vsel %vm113_vm7, %v86_v60, %v112_v62 }
  0x7d   :  { %v24_v5 = vpop.permute.xlu0 %23 }
  0x7e   :  { %vm38_vm1 = vcmp.eq.s32.totalorder %v37_v3, %v24_v5  ;;  %vm29_vm2 = vcmp.eq.s32.totalorder %v24_v5, %v202_v4 }
  0x7f   :  { %v203_v8 = vsel %vm29_vm2, 1.0, %v214_v7  ;;  %v204_v9 = vsel %vm38_vm1, 1.0, %v214_v7 }
  0x80   :  { %v33_v10 = vsel %vm32_vm0, %v203_v8, 0.0  ;;  %v48_v11 = vmul.f32 %v205_v6, %v204_v9 }
  0x81   :  { %34 = vadd.xlane.f32.xlu1 %v33_v10 }
  0x82   :  { %v50_v12 = vsel %vm49_vm3, %v48_v11, 0.0 }
  0x83   :  { %51 = vadd.xlane.f32.xlu0 %v50_v12 }
 0x10a   :  { %v35_v13 = vpop.xlane.xlu1 %34 }
 0x10b   :  { %209 = vrcp.f32 %v35_v13 }
 0x10c   :  { %v52_v14 = vpop.xlane.xlu0 %51 }
 0x10d   :  { %v53_v15 = vadd.f32 1.0, %v52_v14 }
 0x10f   :  { %211 = vrcp.f32 %v53_v15 }
 0x118   :  { %v210_v17 = vpop.eup %209 }
 0x11c   :  { %v212_v18 = vpop.eup %211 }
 0x11d   :  { %v60_v19 = vsub.f32 1.0, %v212_v18  ;;  %v57_v22 = vmul.f32 %v212_v18, %v210_v17 }
 0x11f   :  { %v61_v23 = vmul.f32 %v204_v9, %v60_v19  ;;  %v58_v27 = vmul.f32 %v203_v8, %v57_v22 }
 0x121   :  { %v158_v24 = vrot.slane %v61_v23, %v103_v20  ;;  %v144_v25 = vrot.slane %v61_v23, %v89_v21  ;;  %v151_v28 = vrot.slane %v61_v23, %v96_v26  ;;  %v59_v29 = vmul.f32 0.25, %v58_v27 }
 0x123   :  { %160 = vbcast.lane.b32.xlu0 %v158_v24, 256  ;;  %146 = vbcast.lane.b32.xlu1 %v144_v25, 256  ;;  %v90_v30 = vrot.slane %v59_v29, %v89_v21  ;;  %v97_v31 = vrot.slane %v59_v29, %v96_v26  ;;  %v104_v32 = vrot.slane %v59_v29, %v103_v20 }
 0x127   :  { %153 = vbcast.lane.b32.xlu1 %v151_v28, 256 }
 0x12b   :  { %92 = vbcast.lane.b32.xlu1 %v90_v30, 256 }
 0x12f   :  { %99 = vbcast.lane.b32.xlu1 %v97_v31, 256 }
 0x133   :  { %106 = vbcast.lane.b32.xlu1 %v104_v32, 256 }
 0x195   :  { %v161_v57 = vpop.permute.xlu0 %160  ;;  %v147_v58 = vpop.permute.xlu1 %146 }
 0x196   :  { %v163_v59 = vmul.f32 %v162_v54, %v147_v58  ;;  %v165_v61 = vmul.f32 %v162_v54, %v161_v57 }
 0x198   :  { %v167_v1 = vsel %vm166_vm6, %v163_v59, 0.0  ;;  %v181_v3 = vsel %vm166_vm6, %v165_v61, 0.0 }
 0x199   :  { %v154_v63 = vpop.permute.xlu1 %153  ;;  %v168_v7 = vrot.slane %v167_v1, 4  ;;  %v182_v9 = vrot.slane %v181_v3, 4 }
 0x19a   :  { %v164_v0 = vmul.f32 %v162_v54, %v154_v63 }
 0x19b   :  { %v169_v14 = vadd.f32 %v168_v7, %v167_v1  ;;  %v183_v16 = vadd.f32 %v182_v9, %v181_v3 }
 0x19c   :  { %v174_v4 = vsel %vm166_vm6, %v164_v0, 0.0 }
 0x19d   :  { %v175_v5 = vrot.slane %v174_v4, 4  ;;  %v93_v6 = vpop.permute.xlu1 %92  ;;  %v170_v23 = vrot.slane %v169_v14, 2  ;;  %v184_v25 = vrot.slane %v183_v16, 2 }
 0x19e   :  { %v116_v8 = vmul.f32 %v114_v2, %v93_v6 }
 0x19f   :  { %v176_v10 = vadd.f32 %v175_v5, %v174_v4  ;;  %v171_v32 = vadd.f32 %v170_v23, %v169_v14  ;;  %v185_v33 = vadd.f32 %v184_v25, %v183_v16 }
 0x1a0   :  { %v120_v11 = vsel %vm119_vm8, %v116_v8, 0.0 }
 0x1a1   :  { %v121_v12 = vrot.slane %v120_v11, 4  ;;  %v100_v13 = vpop.permute.xlu1 %99  ;;  %v177_v18 = vrot.slane %v176_v10, 2  ;;  %v172_v40 = vrot.slane %v171_v32, 1  ;;  %v186_v41 = vrot.slane %v185_v33, 1 }
 0x1a2   :  { %v117_v15 = vmul.f32 %v114_v2, %v100_v13 }
 0x1a3   :  { %v122_v17 = vadd.f32 %v121_v12, %v120_v11  ;;  %v178_v27 = vadd.f32 %v177_v18, %v176_v10  ;;  %v173_v47 = vadd.f32 %v172_v40, %v171_v32  ;;  %v187_v49 = vadd.f32 %v186_v41, %v185_v33 }
 0x1a4   :  { %v127_v19 = vsel %vm119_vm8, %v117_v15, 0.0 }
 0x1a5   :  { %v123_v20 = vrot.slane %v122_v17, 2  ;;  %v128_v21 = vrot.slane %v127_v19, 4  ;;  %v107_v22 = vpop.permute.xlu1 %106  ;;  %v179_v36 = vrot.slane %v178_v27, 1 }
 0x1a6   :  { %v118_v24 = vmul.f32 %v114_v2, %v107_v22 }
 0x1a7   :  { %v129_v26 = vadd.f32 %v128_v21, %v127_v19  ;;  %v124_v28 = vadd.f32 %v123_v20, %v122_v17  ;;  %v180_v44 = vadd.f32 %v179_v36, %v178_v27 }
 0x1a8   :  { %v134_v29 = vsel %vm119_vm8, %v118_v24, 0.0 }
 0x1a9   :  { %v130_v30 = vrot.slane %v129_v26, 2  ;;  %v135_v31 = vrot.slane %v134_v29, 4  ;;  %v125_v37 = vrot.slane %v124_v28, 1 }
 0x1ab   :  { %v131_v34 = vadd.f32 %v130_v30, %v129_v26  ;;  %v136_v35 = vadd.f32 %v135_v31, %v134_v29  ;;  %v126_v45 = vadd.f32 %v125_v37, %v124_v28 }
 0x1ad   :  { %v132_v38 = vrot.slane %v131_v34, 1  ;;  %v137_v39 = vrot.slane %v136_v35, 2  ;;  %v188_v51 = vadd.f32 %v173_v47, %v126_v45 }
 0x1af   :  { %v133_v42 = vadd.f32 %v132_v38, %v131_v34  ;;  %v138_v43 = vadd.f32 %v137_v39, %v136_v35 }
 0x1b1   :  { %v139_v46 = vrot.slane %v138_v43, 1  ;;  %v189_v48 = vadd.f32 %v180_v44, %v133_v42 }
 0x1b3   :  { %v140_v50 = vadd.f32 %v139_v46, %v138_v43  ;;  %v194_v53 = vsel %vm111_vm5, %v189_v48, %v188_v51 }
 0x1b5   :  { %v190_v52 = vadd.f32 %v187_v49, %v140_v50 }
 0x1b7   :  { %v195_v54 = vsel %vm113_vm7, %v190_v52, %v194_v53 }
 0x1b8   :  { %197 = vst [vmem:[%s281_s5] sm:$0x7] %v195_v54 }

</bundles_post_ra>
